<compile_context>
chip_gen: v6e
topology: v6e:2x2x1
jax: 0.10.0
libtpu: 0.0.40
codegen_flags: <defaults>
</compile_context>

<pallas_src>
import functools

import jax
import jax.numpy as jnp
from jax import lax
from jax.experimental import pallas as pl
from jax.experimental.pallas import tpu as pltpu

ALPHA = 1.0
GAMMA = 2.0
_LOG_CLAMP = -100.0   # matches PyTorch's binary_cross_entropy log clamp

TILE_ROWS = 4096      # max rows per block: 4096*128*4B = 2 MiB per f32 input tile
LANES = 128


def _round_up(x, m):
    return ((x + m - 1) // m) * m


def _focal_elem(p, t, gamma):
    """Per-element focal term (no alpha, no mean). Used for the ragged tail + reference."""
    log_p = jnp.maximum(jnp.log(p), _LOG_CLAMP)
    log_1mp = jnp.maximum(jnp.log(1.0 - p), _LOG_CLAMP)
    bce = -(t * log_p + (1.0 - t) * log_1mp)
    pt = jnp.exp(-bce)
    return (1.0 - pt) ** gamma * bce


def _focal_loss_kernel(p_ref, t_ref, o_ref, *, gamma, rows_valid, block_rows,
                       mask_last, binary_targets):
    i = pl.program_id(0)

    @pl.when(i == 0)
    def _():
        o_ref[...] = jnp.zeros_like(o_ref)

    # Cast to f32 in-kernel (inputs may arrive as bf16 to halve HBM traffic).
    p = p_ref[...].astype(jnp.float32)
    t = t_ref[...].astype(jnp.float32)

    log_p = jnp.maximum(jnp.log(p), _LOG_CLAMP)
    log_1mp = jnp.maximum(jnp.log(1.0 - p), _LOG_CLAMP)
    bce = -(t * log_p + (1.0 - t) * log_1mp)

    if binary_targets:
        # For t in {0,1}: pt = t*p + (1-t)*(1-p) == exp(-bce) up to the -100 clamp,
        # and drops one EUP transcendental per element (binding unit on v7x).
        pt = t * p + (1.0 - t) * (1.0 - p)
    else:
        pt = jnp.exp(-bce)
    x = 1.0 - pt

    # Avoid float-exponent pow (= exp(gamma*log(x)): two extra EUP ops + log(0) hazard).
    if float(gamma) == 2.0:
        modulator = x * x
    elif float(gamma) == int(gamma):
        modulator = lax.integer_pow(x, int(gamma))
    else:
        modulator = x ** gamma

    focal = modulator * bce          # alpha and 1/N folded into the final wrapper scale

    n_sub = block_rows // 8

    def _accum(vals):
        # (block_rows,128) -> (block_rows//8, 8, 128); leading-axis sum is pure
        # VPU vreg adds into the resident (8,128) output accumulator.
        o_ref[...] += vals.reshape(n_sub, 8, LANES).sum(axis=0)

    if mask_last:
        is_last = i == pl.num_programs(0) - 1

        @pl.when(is_last)
        def _():
            # Ragged row tail: rows past rows_valid hold unspecified (possibly NaN)
            # data from the partial block; select them away before accumulating.
            row0 = i * block_rows
            local = lax.broadcasted_iota(jnp.int32, (block_rows, LANES), 0)
            mask = (row0 + local) < rows_valid
            _accum(jnp.where(mask, focal, 0.0))

        @pl.when(jnp.logical_not(is_last))
        def _():
            _accum(focal)
    else:
        _accum(focal)


def focal_loss(probs, targets, alpha=ALPHA, gamma=GAMMA, binary_targets=False):
    """Pallas TPU focal loss; returns a scalar float32 (mean over all elements)."""
    assert probs.shape == targets.shape
    n_valid = probs.size

    p_flat = jnp.ravel(probs)       # keep original dtype; cast happens in-kernel
    t_flat = jnp.ravel(targets)

    rows = n_valid // LANES
    tail = n_valid - rows * LANES

    total = jnp.zeros((), jnp.float32)

    if tail:
        # <=127 trailing elements: handled with plain jnp, avoids re-materializing
        # the full arrays just to pad them to a lane multiple.
        tp = p_flat[rows * LANES:].astype(jnp.float32)
        tt = t_flat[rows * LANES:].astype(jnp.float32)
        total = total + jnp.sum(_focal_elem(tp, tt, float(gamma)))

    if rows > 0:
        # TODO(synk): when tail > 0 this prefix slice makes one copy of the bulk
        # data; unavoidable without 1-D in-kernel reshapes, and zero-cost when
        # numel % 128 == 0 (the common case).
        p2d = (p_flat[: rows * LANES] if tail else p_flat).reshape(rows, LANES)
        t2d = (t_flat[: rows * LANES] if tail else t_flat).reshape(rows, LANES)

        block_rows = min(TILE_ROWS, _round_up(rows, 8))
        n_tiles = pl.cdiv(rows, block_rows)
        mask_last = (rows % block_rows) != 0

        kernel = functools.partial(
            _focal_loss_kernel,
            gamma=float(gamma),
            rows_valid=rows,
            block_rows=block_rows,
            mask_last=mask_last,
            binary_targets=bool(binary_targets),
        )

        n_main = rows * LANES
        bytes_in = n_main * (p2d.dtype.itemsize + t2d.dtype.itemsize)

        partials = pl.pallas_call(
            kernel,
            out_shape=jax.ShapeDtypeStruct((8, LANES), jnp.float32),
            grid_spec=pltpu.PrefetchScalarGridSpec(
                num_scalar_prefetch=0,
                grid=(n_tiles,),
                in_specs=[
                    pl.BlockSpec((block_rows, LANES), lambda i: (i, 0)),
                    pl.BlockSpec((block_rows, LANES), lambda i: (i, 0)),
                ],
                out_specs=pl.BlockSpec((8, LANES), lambda i: (0, 0)),
            ),
            compiler_params=pltpu.CompilerParams(
                dimension_semantics=("arbitrary",),
                vmem_limit_bytes=32 * 1024 * 1024,
            ),
            cost_estimate=pl.CostEstimate(
                flops=10 * n_main,
                transcendentals=(2 if binary_targets else 3) * n_main,
                bytes_accessed=bytes_in + 8 * LANES * 4,
            ),
        )(p2d, t2d)

        total = total + jnp.sum(partials)

    # Single fused scalar scale: alpha and the mean's 1/N.
    return total * (float(alpha) / float(n_valid))


def _focal_loss_ref(probs, targets, alpha=ALPHA, gamma=GAMMA):
    p = probs.astype(jnp.float32)
    t = targets.astype(jnp.float32)
    return alpha * jnp.mean(_focal_elem(p, t, float(gamma)))


if __name__ == "__main__":
    key = jax.random.PRNGKey(0)
    k1, k2 = jax.random.split(key)
    # Shapes consistent with a segmentation-style use: (B, C, H, W) probabilities.
    shape = (2, 4, 16, 16)
    probs = jax.random.uniform(k1, shape, jnp.float32, minval=0.01, maxval=0.99)
    targets = (jax.random.uniform(k2, shape, jnp.float32) > 0.5).astype(jnp.float32)

    loss = focal_loss(probs, targets)
    loss = jax.block_until_ready(loss)

    ref = _focal_loss_ref(probs, targets)
    assert jnp.allclose(loss, ref, rtol=1e-5, atol=1e-6), (loss, ref)
    print("KERNEL_OK")
</pallas_src>

<mosaic_0001>
module attributes {stable_mosaic.version = 11 : i64} {
  func.func @_focal_loss_kernel(%arg0: i32, %arg1: memref<16x128xf32, #tpu.memory_space<vmem>>, %arg2: memref<16x128xf32, #tpu.memory_space<vmem>>, %arg3: memref<8x128xf32, #tpu.memory_space<vmem>>) attributes {dimension_semantics = [#tpu.dimension_semantics<arbitrary>], iteration_bounds = array<i64: 1>, scalar_prefetch = 0 : i64, scratch_operands = 0 : i64, tpu.core_type = #tpu.core_type<tc>, window_params = [{transform_indices = @transform_0, window_bounds = array<i64: 16, 128>}, {transform_indices = @transform_1, window_bounds = array<i64: 16, 128>}, {pipeline_mode = #tpu.pipeline_mode<synchronous>, transform_indices = @transform_2, window_bounds = array<i64: 8, 128>}]} {
    %c0_i32 = arith.constant 0 : i32
    %0 = arith.cmpi eq, %arg0, %c0_i32 : i32
    %1 = arith.extui %0 : i1 to i32
    %c0_i32_0 = arith.constant 0 : i32
    %2 = arith.cmpi ne, %1, %c0_i32_0 : i32
    scf.if %2 {
      %cst_15 = arith.constant 0.000000e+00 : f32
      %32 = vector.broadcast %cst_15 : f32 to vector<8x128xf32>
      %c0_16 = arith.constant 0 : index
      %c0_17 = arith.constant 0 : index
      %33 = vector.load %arg3[%c0_16, %c0_17] : memref<8x128xf32, #tpu.memory_space<vmem>>, vector<8x128xf32>
      tpu.vector_store %arg3[%c0_16, %c0_17], %32 {strides = array<i32>} : memref<8x128xf32, #tpu.memory_space<vmem>>, vector<8x128xf32>,
    } else {
    }
    %c0 = arith.constant 0 : index
    %c0_1 = arith.constant 0 : index
    %3 = vector.load %arg1[%c0, %c0_1] : memref<16x128xf32, #tpu.memory_space<vmem>>, vector<16x128xf32>
    %c0_2 = arith.constant 0 : index
    %c0_3 = arith.constant 0 : index
    %4 = vector.load %arg2[%c0_2, %c0_3] : memref<16x128xf32, #tpu.memory_space<vmem>>, vector<16x128xf32>
    %5 = math.log %3 : vector<16x128xf32>
    %cst = arith.constant -1.000000e+02 : f32
    %6 = vector.broadcast %cst : f32 to vector<16x128xf32>
    %7 = arith.maximumf %5, %6 : vector<16x128xf32>
    %cst_4 = arith.constant 1.000000e+00 : f32
    %8 = vector.broadcast %cst_4 : f32 to vector<16x128xf32>
    %9 = arith.subf %8, %3 : vector<16x128xf32>
    %10 = math.log %9 : vector<16x128xf32>
    %cst_5 = arith.constant -1.000000e+02 : f32
    %11 = vector.broadcast %cst_5 : f32 to vector<16x128xf32>
    %12 = arith.maximumf %10, %11 : vector<16x128xf32>
    %13 = arith.mulf %4, %7 : vector<16x128xf32>
    %cst_6 = arith.constant 1.000000e+00 : f32
    %14 = vector.broadcast %cst_6 : f32 to vector<16x128xf32>
    %15 = arith.subf %14, %4 : vector<16x128xf32>
    %16 = arith.mulf %15, %12 : vector<16x128xf32>
    %17 = arith.addf %13, %16 : vector<16x128xf32>
    %cst_7 = arith.constant 0.000000e+00 : f32
    %18 = vector.broadcast %cst_7 : f32 to vector<16x128xf32>
    %19 = arith.subf %18, %17 : vector<16x128xf32>
    %cst_8 = arith.constant 0.000000e+00 : f32
    %20 = vector.broadcast %cst_8 : f32 to vector<16x128xf32>
    %21 = arith.subf %20, %19 : vector<16x128xf32>
    %22 = math.exp %21 : vector<16x128xf32>
    %cst_9 = arith.constant 1.000000e+00 : f32
    %23 = vector.broadcast %cst_9 : f32 to vector<16x128xf32>
    %24 = arith.subf %23, %22 : vector<16x128xf32>
    %25 = arith.mulf %24, %24 : vector<16x128xf32>
    %26 = arith.mulf %25, %19 : vector<16x128xf32>
    %c0_10 = arith.constant 0 : index
    %c0_11 = arith.constant 0 : index
    %27 = vector.load %arg3[%c0_10, %c0_11] : memref<8x128xf32, #tpu.memory_space<vmem>>, vector<8x128xf32>
    %28 = vector.shape_cast %26 : vector<16x128xf32> to vector<2x8x128xf32>
    %cst_12 = arith.constant dense<0.000000e+00> : vector<8x128xf32>
    %29 = vector.multi_reduction <add>, %28, %cst_12 [0] : vector<2x8x128xf32> to vector<8x128xf32>
    %30 = arith.addf %27, %29 : vector<8x128xf32>
    %c0_13 = arith.constant 0 : index
    %c0_14 = arith.constant 0 : index
    %31 = vector.load %arg3[%c0_13, %c0_14] : memref<8x128xf32, #tpu.memory_space<vmem>>, vector<8x128xf32>
    tpu.vector_store %arg3[%c0_13, %c0_14], %30 {strides = array<i32>} : memref<8x128xf32, #tpu.memory_space<vmem>>, vector<8x128xf32>,
    return
  }
  func.func @transform_0(%arg0: i32) -> (i32, i32) {
    %c0_i32 = arith.constant 0 : i32
    %c0_i32_0 = arith.constant 0 : i32
    return %arg0, %c0_i32 : i32, i32
  }
  func.func @transform_1(%arg0: i32) -> (i32, i32) {
    %c0_i32 = arith.constant 0 : i32
    %c0_i32_0 = arith.constant 0 : i32
    return %arg0, %c0_i32 : i32, i32
  }
  func.func @transform_2(%arg0: i32) -> (i32, i32) {
    %c0_i32 = arith.constant 0 : i32
    %c0_i32_0 = arith.constant 0 : i32
    %c0_i32_1 = arith.constant 0 : i32
    return %c0_i32, %c0_i32_0 : i32, i32
  }
}

</mosaic_0001>

<bundles_post_ra>
// kernel: tpu_custom_call.1
= control target key start
LH: loop header
LB: loop body
LE: loop exit
PB: predicated region body
PF: predicated region fallthrough
CT: control target
= control target key end

     0   :  { %7 = vsyncpa [#allocation3], 0  ;;  %s218_s0 = inlined_call_operand.hbm [shape: f32[16,128], index: 0, kind: input, shape index: {}]   ;;  %s219_s1 = inlined_call_operand.hbm [shape: f32[16,128], index: 1, kind: input, shape index: {}]   ;;  %s220_s2 = inlined_call_operand.hbm [shape: f32[8,128], index: 2, kind: output, shape index: {}]  }
   0x1   :  { %8 = vsyncpa [#allocation6], 0 }
   0x2   :  { %9 = vsyncpa [#allocation4], 0  ;;  %s189_s9 = smov [#allocation2]  }
   0x3   :  { %s15_s10 = sshll.u32 %s189_s9, 4  ;;  %s16_s10 = int_to_ptr.vmem [resolvable:$true] %s15_s10 }
   0x4   :  { %s131_s11 = scalar_lea.vmem %s16_s10, 256  ;;  %p136_p1 = scmp.lt.s32.totalorder %s16_s10, %s16_s10 }
   0x5   :  { %p132_p0 = scmp.ne.s32.totalorder %s16_s10, %s131_s11  ;;  %p137_p2 = scmp.lt.s32.totalorder %s131_s11, %s131_s11 }
   0x7   :  { %p138_p3 = por %p137_p2, %p136_p1 }
   0x9   :  { %p139_p4 = pnand %p138_p3, %p132_p0 }
   0xb   :  { %142 = shalt.err (!%p139_p4)
}
   0xc   :  { %s190_s12 = smov 128   ;;  %s191_s13 = smov 8  }
   0xd   :  { %21 = dma.hbm_to_vmem [thread:$0]  %s218_s0, 256, %s16_s10, [#allocation3], %s190_s12, %s190_s12, %s191_s13  }
   0xe   :  { %s192_s16 = smov [#allocation5]  }
   0xf   :  { %s27_s17 = sshll.u32 %s192_s16, 4  ;;  %s28_s17 = int_to_ptr.vmem [resolvable:$true] %s27_s17 }
  0x10   :  { %s151_s18 = scalar_lea.vmem %s28_s17, 256  ;;  %p156_p6 = scmp.lt.s32.totalorder %s28_s17, %s28_s17 }
  0x11   :  { %p152_p5 = scmp.ne.s32.totalorder %s28_s17, %s151_s18  ;;  %p157_p7 = scmp.lt.s32.totalorder %s151_s18, %s151_s18 }
  0x13   :  { %p158_p8 = por %p157_p7, %p156_p6 }
  0x15   :  { %p159_p9 = pnand %p158_p8, %p152_p5 }
  0x17   :  { %162 = shalt.err (!%p159_p9)
}
  0x18   :  { %33 = dma.hbm_to_vmem [thread:$0]  %s219_s1, 256, %s28_s17, [#allocation6], %s190_s12, %s190_s12, %s191_s13  }
  0x19   :  { %183 = dma.done.wait [#allocation3], 256  }
  0x1a   :  { %184 = vsyncadd [#allocation3], 4294967040 }
  0x1b   :  { %185 = dma.done.wait [#allocation6], 256  }
  0x1c   :  { %186 = vsyncadd [#allocation6], 4294967040  ;;  %v45_v0 = vld [vmem:[#allocation2] sm:$0xff]  ;;  %v46_v1 = vld [vmem:[#allocation2 + $0x8] sm:$0xff]  ;;  %s193_s0 = smov [#allocation7]  }
  0x1d   :  { %111 = vlog2.f32 %v45_v0  ;;  %v55_v2 = vsub.f32 1.0, %v45_v0  ;;  %v56_v3 = vsub.f32 1.0, %v46_v1  ;;  %v47_v5 = vld [vmem:[#allocation5] sm:$0xff]  ;;  %v48_v7 = vld [vmem:[#allocation5 + $0x8] sm:$0xff]  ;;  %s95_s1 = sshll.u32 %s193_s0, 4  ;;  %s96_s1 = int_to_ptr.vmem [resolvable:$true] %s95_s1 }
  0x1e   :  { %113 = vlog2.f32 %v46_v1  ;;  %v65_v14 = vsub.f32 1.0, %v47_v5  ;;  %v66_v17 = vsub.f32 1.0, %v48_v7  ;;  %s163_s21 = scalar_lea.vmem %s96_s1, 128  ;;  %p168_p11 = scmp.lt.s32.totalorder %s96_s1, %s96_s1 }
  0x1f   :  { %115 = vlog2.f32 %v55_v2  ;;  %p164_p10 = scmp.ne.s32.totalorder %s96_s1, %s163_s21  ;;  %p169_p12 = scmp.lt.s32.totalorder %s163_s21, %s163_s21 }
  0x20   :  { %117 = vlog2.f32 %v56_v3 }
  0x21   :  { %p170_p13 = por %p169_p12, %p168_p11 }
  0x23   :  { %p171_p0 = pnand %p170_p13, %p164_p10 }
  0x2a   :  { %v112_v4 = vpop.eup %111 }
  0x2b   :  { %v114_v6 = vpop.eup %113  ;;  %v50_v8 = vmul.f32 0.6931472, %v112_v4 }
  0x2c   :  { %v116_v9 = vpop.eup %115  ;;  %v52_v10 = vmul.f32 0.6931472, %v114_v6 }
  0x2d   :  { %v118_v11 = vpop.eup %117  ;;  %v53_v12 = vmax.f32 %v50_v8, -100.0  ;;  %v58_v13 = vmul.f32 0.6931472, %v116_v9 }
  0x2e   :  { %v54_v15 = vmax.f32 %v52_v10, -100.0  ;;  %v60_v16 = vmul.f32 0.6931472, %v118_v11 }
  0x2f   :  { %v61_v18 = vmax.f32 %v58_v13, -100.0  ;;  %v63_v19 = vmul.f32 %v53_v12, %v47_v5 }
  0x30   :  { %v62_v20 = vmax.f32 %v60_v16, -100.0  ;;  %v64_v21 = vmul.f32 %v54_v15, %v48_v7 }
  0x31   :  { %v67_v22 = vmul.f32 %v65_v14, %v61_v18 }
  0x32   :  { %v68_v23 = vmul.f32 %v66_v17, %v62_v20 }
  0x33   :  { %v69_v24 = vadd.f32 %v67_v22, %v63_v19 }
  0x34   :  { %v70_v25 = vadd.f32 %v68_v23, %v64_v21 }
  0x35   :  { %v71_v26 = vsub.f32 0.0, %v69_v24 }
  0x36   :  { %v72_v27 = vsub.f32 0.0, %v70_v25 }
  0x37   :  { %v73_v28 = vsub.f32 0.0, %v71_v26 }
  0x38   :  { %v74_v29 = vsub.f32 0.0, %v72_v27 }
  0x39   :  { %v75_v30 = vmul.f32 1.442695, %v73_v28 }
  0x3a   :  { %v77_v31 = vmul.f32 1.442695, %v74_v29 }
  0x3b   :  { %119 = vpow2.f32 %v75_v30 }
  0x3c   :  { %121 = vpow2.f32 %v77_v31 }
  0x48   :  { %v120_v32 = vpop.eup %119 }
  0x49   :  { %v122_v33 = vpop.eup %121  ;;  %v79_v34 = vsub.f32 1.0, %v120_v32 }
  0x4a   :  { %v80_v35 = vsub.f32 1.0, %v122_v33 }
  0x4b   :  { %v81_v36 = vmul.f32 %v79_v34, %v79_v34 }
  0x4c   :  { %v82_v37 = vmul.f32 %v80_v35, %v80_v35 }
  0x4d   :  { %v83_v38 = vmul.f32 %v81_v36, %v71_v26 }
  0x4e   :  { %v84_v39 = vmul.f32 %v82_v37, %v72_v27 }
  0x50   :  { %v86_v40 = vadd.f32 %v84_v39, %v83_v38 }
  0x52   :  { %88 = vst [vmem:[#allocation7] sm:$0xff] %v86_v40 }
  0x53   :  { %174 = shalt.err (!%p171_p0)
}
  0x54   :  { %98 = dma.vmem_to_hbm [thread:$0]  %s96_s1, 128, %s220_s2, [#allocation4]  }
  0x55   :  { %187 = dma.done.wait [#allocation4], 128  }
  0x56   :  { %188 = vsyncadd [#allocation4], 4294967168 }
  0x57   :  { %102 = vsyncpa [#allocation3], 1 }
  0x58   :  { %103 = vsyncpa [#allocation6], 1 }
  0x59   :  { %104 = vsyncpa [#allocation4], 1 }

</bundles_post_ra>
